<compile_context>
chip_gen: v7x
topology: tpu7x:2x2x1
jax: 0.10.0
libtpu: 0.0.40
codegen_flags: <defaults>
</compile_context>

<pallas_src>
import functools

import jax
import jax.numpy as jnp
import numpy as np
from jax import lax
from jax.experimental import pallas as pl
from jax.experimental.pallas import tpu as pltpu

_LANE = 128      # last-dim (lane) alignment
_MIB = 1024 * 1024


def _round_up(x, m):
    return (x + m - 1) // m * m


def _vmem_capacity_bytes():
    """Trace-time VMEM capacity query (per-TensorCore); conservative fallback."""
    try:
        info = pltpu.get_tpu_info()
        cap = getattr(info, "vmem_capacity_bytes", None)
        if cap:
            return int(cap)
    except Exception:
        pass
    return 64 * _MIB   # conservative (v7x-sized) fallback


def _pick_tile(dim, candidates):
    """Largest candidate that divides dim (dim is a multiple of 128 after packing)."""
    for c in candidates:
        if dim % c == 0:
            return c
    return dim


# ---------------------------------------------------------------------------
# Fused whole-MLP kernel (batch-tiled grid, weights resident in VMEM)
# ---------------------------------------------------------------------------
def _fused_mlp_kernel(*refs, n_layers, compute_dtype, precision):
    """refs = (x, w0, b0, w1, b1, ..., out). Chains matmul + bias (+ ReLU)."""
    x_ref = refs[0]
    o_ref = refs[-1]
    h = x_ref[...].astype(compute_dtype)
    for i in range(n_layers):
        w_ref = refs[1 + 2 * i]
        b_ref = refs[2 + 2 * i]
        h = jnp.dot(h, w_ref[...], preferred_element_type=jnp.float32,
                    precision=precision)
        h = h + b_ref[...].astype(jnp.float32)           # bias kept in f32
        if i != n_layers - 1:
            h = jnp.maximum(h, 0.0).astype(compute_dtype)
    o_ref[...] = h.astype(o_ref.dtype)


def _fused_mlp(h, packed_params, *, tm, grid_m, b_pad, k_pad, n_pad,
               compute_dtype, precision, vmem_limit):
    """h: (B, K) f32; packed params already (in_pad, out_pad)/(1, out_pad)."""
    B, K = h.shape
    if (B, K) == (b_pad, k_pad):
        xp = h                       # no wrapper-side pad (no extra HBM pass)
    else:
        xp = jnp.zeros((b_pad, k_pad), h.dtype).at[:B, :K].set(h)

    args = [xp]
    for w, b in packed_params:
        args.extend([w, b])
    n_layers = len(packed_params)

    kernel = functools.partial(_fused_mlp_kernel, n_layers=n_layers,
                               compute_dtype=compute_dtype, precision=precision)
    # x / out are tiled over the batch; weights & biases are whole-array VMEM
    # residents (DMA'd once, shared by all batch tiles / both v7x cores).
    in_specs = [pl.BlockSpec((tm, k_pad), lambda m: (m, 0))]
    in_specs += [pl.BlockSpec(memory_space=pltpu.MemorySpace.VMEM)] * (2 * n_layers)
    out_specs = pl.BlockSpec((tm, n_pad), lambda m: (m, 0))

    return pl.pallas_call(
        kernel,
        out_shape=jax.ShapeDtypeStruct((b_pad, n_pad), jnp.float32),
        grid=(grid_m,),
        in_specs=in_specs,
        out_specs=out_specs,
        compiler_params=pltpu.CompilerParams(
            dimension_semantics=("parallel",),
            vmem_limit_bytes=int(vmem_limit)),
    )(*args)


# ---------------------------------------------------------------------------
# Tiled fallback: one Linear layer as a canonical (M, N, K) matmul kernel
# ---------------------------------------------------------------------------
def _tiled_linear_kernel(x_ref, w_ref, b_ref, o_ref, acc_ref, *,
                         apply_relu, compute_dtype, precision):
    k = pl.program_id(2)

    @pl.when(k == 0)
    def _():
        # Fold the bias into the accumulator init (saves an epilogue VPU pass).
        acc_ref[...] = jnp.broadcast_to(
            b_ref[...].astype(jnp.float32), acc_ref.shape)

    acc_ref[...] += jnp.dot(
        x_ref[...].astype(compute_dtype), w_ref[...],
        preferred_element_type=jnp.float32, precision=precision)

    @pl.when(k == pl.num_programs(2) - 1)
    def _():
        out = acc_ref[...]
        if apply_relu:
            out = jnp.maximum(out, 0.0)
        o_ref[...] = out.astype(o_ref.dtype)


def _tiled_linear(x, w, b, *, apply_relu, compute_dtype, precision, out_dtype,
                  vmem_limit):
    """x: (B, K), w: (Kw, N) pre-transposed & 128-padded, b: (1, N)."""
    B, K = x.shape
    Kw, N = w.shape
    assert K <= Kw and Kw % _LANE == 0 and N % _LANE == 0

    # Tile sizes: divisors of the already-packed dims -> NO per-call weight
    # re-padding (the big tensors stream from HBM untouched).
    tm = min(512, _round_up(B, 16))          # 16 covers f32(8) and bf16(16) sublane
    Bp = _round_up(B, tm)
    tk = _pick_tile(Kw, (1024, 512, 256, 128))
    tn = _pick_tile(N, (512, 256, 128))

    if (B, K) == (Bp, Kw):
        xp = x
    else:
        xp = jnp.zeros((Bp, Kw), x.dtype).at[:B, :K].set(x)

    kernel = functools.partial(_tiled_linear_kernel, apply_relu=apply_relu,
                               compute_dtype=compute_dtype, precision=precision)
    out = pl.pallas_call(
        kernel,
        out_shape=jax.ShapeDtypeStruct((Bp, N), out_dtype),
        grid_spec=pltpu.PrefetchScalarGridSpec(
            num_scalar_prefetch=0,
            grid=(Bp // tm, N // tn, Kw // tk),
            in_specs=[
                pl.BlockSpec((tm, tk), lambda m, n, k: (m, k)),
                pl.BlockSpec((tk, tn), lambda m, n, k: (k, n)),
                pl.BlockSpec((1, tn), lambda m, n, k: (0, n)),
            ],
            out_specs=pl.BlockSpec((tm, tn), lambda m, n, k: (m, n)),
            scratch_shapes=[pltpu.VMEM((tm, tn), jnp.float32)],
        ),
        compiler_params=pltpu.CompilerParams(
            dimension_semantics=("parallel", "parallel", "arbitrary"),
            vmem_limit_bytes=int(vmem_limit)),
    )(xp, w, b)
    # Keep rows/cols padded (lane/sublane dense) between layers; final slice is
    # done once in mlp_forward.
    return out


def _tiled_mlp(h, packed_params, *, compute_dtype, precision, vmem_limit):
    n_layers = len(packed_params)
    for i, (w, b) in enumerate(packed_params):
        last = (i == n_layers - 1)
        h = _tiled_linear(
            h, w, b,
            apply_relu=not last,
            compute_dtype=compute_dtype,
            precision=precision,
            # Hidden activations stay in the compute dtype (halves inter-layer
            # HBM traffic); final logits come out in f32.
            out_dtype=(jnp.float32 if last else compute_dtype),
            vmem_limit=vmem_limit)
    return h


# ---------------------------------------------------------------------------
# Parameter handling
# ---------------------------------------------------------------------------
def init_mlp_params(key, input_dim, num_classes, hidden_dims):
    """Deterministic params with torch.nn.Linear layout: w (out, in), b (out,)."""
    in_dim = int(np.prod(input_dim))
    dims = list(hidden_dims) + [num_classes]
    params = []
    for out_dim in dims:
        key, kw, kb = jax.random.split(key, 3)
        bound = 1.0 / float(np.sqrt(in_dim))
        w = jax.random.uniform(kw, (out_dim, in_dim), jnp.float32, -bound, bound)
        b = jax.random.uniform(kb, (out_dim,), jnp.float32, -bound, bound)
        params.append((w, b))
        in_dim = out_dim
    return params


def pack_mlp_params(params, compute_dtype=jnp.bfloat16):
    """One-time (outside the hot path): transpose weights to (in, out), cast to
    the compute dtype (bf16 by default -> half the weight HBM bytes; matmuls
    still accumulate in f32) and zero-pad in/out dims to lane multiples so
    layers chain without re-padding and output stores are lane-dense.
    Biases stay in f32 (tiny, added to the f32 accumulator)."""
    packed = []
    for w, b in params:
        out_dim, in_dim = w.shape
        in_p = _round_up(in_dim, _LANE)
        out_p = _round_up(out_dim, _LANE)
        wt = (jnp.zeros((in_p, out_p), compute_dtype)
              .at[:in_dim, :out_dim].set(w.T.astype(compute_dtype)))
        bp = jnp.zeros((1, out_p), jnp.float32).at[0, :out_dim].set(
            b.astype(jnp.float32))
        packed.append((wt, bp))
    return tuple(packed)


# ---------------------------------------------------------------------------
# Forward pass (jitted)
# ---------------------------------------------------------------------------
@functools.partial(jax.jit, static_argnames=("num_classes", "force_tiled"))
def mlp_forward(x, packed_params, *, num_classes, force_tiled=False):
    """x: (B, C, H, W) -> logits (B, num_classes) in f32."""
    B = x.shape[0]
    h = x.reshape(B, -1).astype(jnp.float32)

    compute_dtype = packed_params[0][0].dtype
    # f32 packing -> exact f32 matmul (bit-close to the PyTorch reference);
    # bf16 packing -> default MXU precision (f32 accumulation).
    precision = (lax.Precision.HIGHEST if compute_dtype == jnp.float32
                 else lax.Precision.DEFAULT)

    k_pad = packed_params[0][0].shape[0]
    n_pad = packed_params[-1][0].shape[1]
    max_width = max(k_pad, max(w.shape[1] for w, _ in packed_params))

    # --- generation-aware VMEM budget --------------------------------------
    vmem_cap = _vmem_capacity_bytes()
    # ~44 MiB fused cap on v7x (64 MiB VMEM/TC), ~100 MiB on v5e/v6e (128 MiB).
    fused_cap = int(vmem_cap * (0.70 if vmem_cap <= 96 * _MIB else 0.78))
    tiled_vmem_limit = min(64 * _MIB, vmem_cap // 2)

    # --- fused-path batch tiling (grid over M; uses both v7x TensorCores) ---
    TM_FUSED = 256
    if B <= TM_FUSED:
        tm, b_pad, grid_m = B, B, 1          # full-dim block: no row padding
    else:
        tm = TM_FUSED
        b_pad = _round_up(B, tm)
        grid_m = b_pad // tm

    # --- static VMEM footprint estimate for the fully fused kernel ----------
    weight_bytes = sum(w.size * w.dtype.itemsize + b.size * b.dtype.itemsize
                       for w, b in packed_params)
    act_bytes = 2 * tm * max_width * 4                          # f32 intermediates
    io_bytes = 2 * tm * (k_pad * h.dtype.itemsize + n_pad * 4)  # 2x-buffered x/out
    fused_bytes = weight_bytes + act_bytes + io_bytes + 2 * _MIB

    if (not force_tiled) and fused_bytes <= fused_cap:
        fused_vmem_limit = min(fused_cap, max(fused_bytes + 8 * _MIB, 32 * _MIB))
        out = _fused_mlp(h, packed_params, tm=tm, grid_m=grid_m, b_pad=b_pad,
                         k_pad=k_pad, n_pad=n_pad, compute_dtype=compute_dtype,
                         precision=precision, vmem_limit=fused_vmem_limit)
    else:
        out = _tiled_mlp(h, packed_params, compute_dtype=compute_dtype,
                         precision=precision, vmem_limit=tiled_vmem_limit)

    return out[:B, :num_classes].astype(jnp.float32)


if __name__ == "__main__":
    key = jax.random.PRNGKey(0)
    input_dim = (4, 16, 16)     # flattens to 1024
    hidden_dims = [32, 32]
    num_classes = 10
    batch = 2

    k_x, k_p = jax.random.split(key)
    x = jax.random.normal(k_x, (batch,) + input_dim, jnp.float32)
    params = init_mlp_params(k_p, input_dim, num_classes, hidden_dims)

    # plain-JAX reference with torch semantics: h @ w.T + b, ReLU between layers
    h_ref = x.reshape(batch, -1)
    for i, (w, b) in enumerate(params):
        h_ref = jnp.dot(h_ref, w.T, precision=lax.Precision.HIGHEST) + b
        if i != len(params) - 1:
            h_ref = jnp.maximum(h_ref, 0.0)

    # --- bf16-weight path (default, fastest) --------------------------------
    packed_bf16 = pack_mlp_params(params, compute_dtype=jnp.bfloat16)
    out = jax.block_until_ready(mlp_forward(x, packed_bf16, num_classes=num_classes))
    assert out.shape == (batch, num_classes)
    assert jnp.allclose(out, h_ref, atol=5e-2, rtol=5e-2)

    out_tiled = jax.block_until_ready(
        mlp_forward(x, packed_bf16, num_classes=num_classes, force_tiled=True))
    assert jnp.allclose(out_tiled, h_ref, atol=5e-2, rtol=5e-2)

    # --- f32-weight path (bit-close, precision=HIGHEST) ---------------------
    packed_f32 = pack_mlp_params(params, compute_dtype=jnp.float32)
    out_f32 = jax.block_until_ready(
        mlp_forward(x, packed_f32, num_classes=num_classes))
    assert jnp.allclose(out_f32, h_ref, atol=1e-4, rtol=1e-4)

    out_f32_tiled = jax.block_until_ready(
        mlp_forward(x, packed_f32, num_classes=num_classes, force_tiled=True))
    assert jnp.allclose(out_f32_tiled, h_ref, atol=1e-4, rtol=1e-4)

    print("KERNEL_OK")
</pallas_src>

<mosaic_0001>
module attributes {stable_mosaic.version = 11 : i64} {
  func.func @_fused_mlp_kernel(%arg0: i32, %arg1: memref<2x1024xf32, #tpu.memory_space<vmem>>, %arg2: memref<1024x128xbf16, #tpu.memory_space<vmem>>, %arg3: memref<1x128xf32, #tpu.memory_space<vmem>>, %arg4: memref<128x128xbf16, #tpu.memory_space<vmem>>, %arg5: memref<1x128xf32, #tpu.memory_space<vmem>>, %arg6: memref<128x128xbf16, #tpu.memory_space<vmem>>, %arg7: memref<1x128xf32, #tpu.memory_space<vmem>>, %arg8: memref<2x128xf32, #tpu.memory_space<vmem>>) attributes {dimension_semantics = [#tpu.dimension_semantics<parallel>], iteration_bounds = array<i64: 1>, scalar_prefetch = 0 : i64, scratch_operands = 0 : i64, tpu.core_type = #tpu.core_type<tc>, window_params = [{transform_indices = @transform_0, window_bounds = array<i64: 2, 1024>}, {pipeline_mode = #tpu.pipeline_mode<synchronous>, transform_indices = @transform_1, window_bounds = array<i64: 1024, 128>}, {pipeline_mode = #tpu.pipeline_mode<synchronous>, transform_indices = @transform_2, window_bounds = array<i64: 1, 128>}, {pipeline_mode = #tpu.pipeline_mode<synchronous>, transform_indices = @transform_3, window_bounds = array<i64: 128, 128>}, {pipeline_mode = #tpu.pipeline_mode<synchronous>, transform_indices = @transform_4, window_bounds = array<i64: 1, 128>}, {pipeline_mode = #tpu.pipeline_mode<synchronous>, transform_indices = @transform_5, window_bounds = array<i64: 128, 128>}, {pipeline_mode = #tpu.pipeline_mode<synchronous>, transform_indices = @transform_6, window_bounds = array<i64: 1, 128>}, {transform_indices = @transform_7, window_bounds = array<i64: 2, 128>}]} {
    %c0 = arith.constant 0 : index
    %c0_0 = arith.constant 0 : index
    %0 = vector.load %arg1[%c0, %c0_0] : memref<2x1024xf32, #tpu.memory_space<vmem>>, vector<2x1024xf32>
    %1 = arith.truncf %0 : vector<2x1024xf32> to vector<2x1024xbf16>
    %c0_1 = arith.constant 0 : index
    %c0_2 = arith.constant 0 : index
    %2 = vector.load %arg2[%c0_1, %c0_2] : memref<1024x128xbf16, #tpu.memory_space<vmem>>, vector<1024x128xbf16>
    %cst = arith.constant dense<0.000000e+00> : vector<2x128xf32>
    %3 = tpu.matmul %1, %2, %cst {dimension_numbers = #tpu.dot_dimension_numbers<[1], [0], [0], [1], [0, 0, 1, 1], [], []>} : vector<2x1024xbf16>, vector<1024x128xbf16>, vector<2x128xf32> -> vector<2x128xf32>
    %c0_3 = arith.constant 0 : index
    %c0_4 = arith.constant 0 : index
    %4 = vector.load %arg3[%c0_3, %c0_4] : memref<1x128xf32, #tpu.memory_space<vmem>>, vector<1x128xf32>
    %5 = vector.broadcast %4 : vector<1x128xf32> to vector<2x128xf32>
    %6 = arith.addf %3, %5 : vector<2x128xf32>
    %cst_5 = arith.constant 0.000000e+00 : f32
    %7 = vector.broadcast %cst_5 : f32 to vector<2x128xf32>
    %8 = arith.maximumf %6, %7 : vector<2x128xf32>
    %9 = arith.truncf %8 : vector<2x128xf32> to vector<2x128xbf16>
    %c0_6 = arith.constant 0 : index
    %c0_7 = arith.constant 0 : index
    %10 = vector.load %arg4[%c0_6, %c0_7] : memref<128x128xbf16, #tpu.memory_space<vmem>>, vector<128x128xbf16>
    %cst_8 = arith.constant dense<0.000000e+00> : vector<2x128xf32>
    %11 = tpu.matmul %9, %10, %cst_8 {dimension_numbers = #tpu.dot_dimension_numbers<[1], [0], [0], [1], [0, 0, 1, 1], [], []>} : vector<2x128xbf16>, vector<128x128xbf16>, vector<2x128xf32> -> vector<2x128xf32>
    %c0_9 = arith.constant 0 : index
    %c0_10 = arith.constant 0 : index
    %12 = vector.load %arg5[%c0_9, %c0_10] : memref<1x128xf32, #tpu.memory_space<vmem>>, vector<1x128xf32>
    %13 = vector.broadcast %12 : vector<1x128xf32> to vector<2x128xf32>
    %14 = arith.addf %11, %13 : vector<2x128xf32>
    %cst_11 = arith.constant 0.000000e+00 : f32
    %15 = vector.broadcast %cst_11 : f32 to vector<2x128xf32>
    %16 = arith.maximumf %14, %15 : vector<2x128xf32>
    %17 = arith.truncf %16 : vector<2x128xf32> to vector<2x128xbf16>
    %c0_12 = arith.constant 0 : index
    %c0_13 = arith.constant 0 : index
    %18 = vector.load %arg6[%c0_12, %c0_13] : memref<128x128xbf16, #tpu.memory_space<vmem>>, vector<128x128xbf16>
    %cst_14 = arith.constant dense<0.000000e+00> : vector<2x128xf32>
    %19 = tpu.matmul %17, %18, %cst_14 {dimension_numbers = #tpu.dot_dimension_numbers<[1], [0], [0], [1], [0, 0, 1, 1], [], []>} : vector<2x128xbf16>, vector<128x128xbf16>, vector<2x128xf32> -> vector<2x128xf32>
    %c0_15 = arith.constant 0 : index
    %c0_16 = arith.constant 0 : index
    %20 = vector.load %arg7[%c0_15, %c0_16] : memref<1x128xf32, #tpu.memory_space<vmem>>, vector<1x128xf32>
    %21 = vector.broadcast %20 : vector<1x128xf32> to vector<2x128xf32>
    %22 = arith.addf %19, %21 : vector<2x128xf32>
    %c0_17 = arith.constant 0 : index
    %c0_18 = arith.constant 0 : index
    %23 = vector.load %arg8[%c0_17, %c0_18] : memref<2x128xf32, #tpu.memory_space<vmem>>, vector<2x128xf32>
    tpu.vector_store %arg8[%c0_17, %c0_18], %22 {strides = array<i32>} : memref<2x128xf32, #tpu.memory_space<vmem>>, vector<2x128xf32>,
    return
  }
  func.func @transform_0(%arg0: i32) -> (i32, i32) {
    %c0_i32 = arith.constant 0 : i32
    %c0_i32_0 = arith.constant 0 : i32
    return %arg0, %c0_i32 : i32, i32
  }
  func.func @transform_1(%arg0: i32) -> (i32, i32) {
    %c0_i32 = arith.constant 0 : i32
    %c0_i32_0 = arith.constant 0 : i32
    %c0_i32_1 = arith.constant 0 : i32
    return %c0_i32, %c0_i32_0 : i32, i32
  }
  func.func @transform_2(%arg0: i32) -> (i32, i32) {
    %c0_i32 = arith.constant 0 : i32
    %c0_i32_0 = arith.constant 0 : i32
    %c0_i32_1 = arith.constant 0 : i32
    return %c0_i32, %c0_i32_0 : i32, i32
  }
  func.func @transform_3(%arg0: i32) -> (i32, i32) {
    %c0_i32 = arith.constant 0 : i32
    %c0_i32_0 = arith.constant 0 : i32
    %c0_i32_1 = arith.constant 0 : i32
    return %c0_i32, %c0_i32_0 : i32, i32
  }
  func.func @transform_4(%arg0: i32) -> (i32, i32) {
    %c0_i32 = arith.constant 0 : i32
    %c0_i32_0 = arith.constant 0 : i32
    %c0_i32_1 = arith.constant 0 : i32
    return %c0_i32, %c0_i32_0 : i32, i32
  }
  func.func @transform_5(%arg0: i32) -> (i32, i32) {
    %c0_i32 = arith.constant 0 : i32
    %c0_i32_0 = arith.constant 0 : i32
    %c0_i32_1 = arith.constant 0 : i32
    return %c0_i32, %c0_i32_0 : i32, i32
  }
  func.func @transform_6(%arg0: i32) -> (i32, i32) {
    %c0_i32 = arith.constant 0 : i32
    %c0_i32_0 = arith.constant 0 : i32
    %c0_i32_1 = arith.constant 0 : i32
    return %c0_i32, %c0_i32_0 : i32, i32
  }
  func.func @transform_7(%arg0: i32) -> (i32, i32) {
    %c0_i32 = arith.constant 0 : i32
    %c0_i32_0 = arith.constant 0 : i32
    return %arg0, %c0_i32 : i32, i32
  }
}

</mosaic_0001>

<bundles_post_ra>
// kernel: mlp_forward.1
= control target key start
LH: loop header
LB: loop body
LE: loop exit
PB: predicated region body
PF: predicated region fallthrough
CT: control target
= control target key end

     0   :  { %12 = vsyncpa [#allocation3], 0  ;;  %s1541_s0 = inlined_call_operand.vmem [shape: f32[2,1024], index: 0, kind: input, shape index: {}]   ;;  %s1542_s1 = inlined_call_operand.hbm [shape: bf16[1024,128], index: 1, kind: input, shape index: {}]   ;;  %s1543_s2 = inlined_call_operand.vmem [shape: f32[1,128], index: 2, kind: input, shape index: {}]   ;;  %s1544_s3 = inlined_call_operand.vmem [shape: bf16[128,128], index: 3, kind: input, shape index: {}]   ;;  %s1545_s4 = inlined_call_operand.vmem [shape: f32[1,128], index: 4, kind: input, shape index: {}]   ;;  %s1546_s5 = inlined_call_operand.vmem [shape: bf16[128,128], index: 5, kind: input, shape index: {}]   ;;  %s1547_s6 = inlined_call_operand.vmem [shape: f32[1,128], index: 6, kind: input, shape index: {}]   ;;  %s1548_s7 = inlined_call_operand.hbm [shape: f32[2,128], index: 7, kind: output, shape index: {}]  }
   0x1   :  { %13 = vsyncpa [#allocation4], 0  ;;  %s1383_s24 = smov [#allocation2]   ;;  %s1335_s28 = scalar_lea.hbm %s1542_s1, 8192 }
   0x2   :  { %s21_s25 = sshll.u32 %s1383_s24, 4  ;;  %p1336_p0 = scmp.ne.s32.totalorder %s1542_s1, %s1335_s28  ;;  %s22_s25 = int_to_ptr.vmem [resolvable:$true] %s21_s25 }
   0x3   :  { %p1339_p1 = scmp.lt.u32.totalorder %s1335_s28, %s1542_s1 }
   0x5   :  { %p1341_p2 = pnand %p1339_p1, %p1336_p0 }
   0x7   :  { %1344 = shalt.err (!%p1341_p2)
}
   0x8   :  { %s1345_s10 = scalar_lea.vmem %s22_s25, 8192  ;;  %p1350_p4 = scmp.lt.s32.totalorder %s22_s25, %s22_s25 }
   0x9   :  { %p1346_p3 = scmp.ne.s32.totalorder %s22_s25, %s1345_s10  ;;  %p1351_p5 = scmp.lt.s32.totalorder %s1345_s10, %s1345_s10 }
   0xb   :  { %p1352_p6 = por %p1351_p5, %p1350_p4 }
   0xd   :  { %p1353_p7 = pnand %p1352_p6, %p1346_p3 }
   0xf   :  { %1356 = shalt.err (!%p1353_p7)
}
  0x10   :  { %s1384_s11 = smov 64   ;;  %s1385_s12 = smov 4  }
  0x11   :  { %27 = dma.hbm_to_vmem [thread:$0]  %s1542_s1, 8192, %s22_s25, [#allocation3], %s1384_s11, %s1384_s11, %s1385_s12  }
  0x12   :  { %1379 = dma.done.wait [#allocation3], 8192  }
  0x13   :  { %1380 = vsyncadd [#allocation3], 4294959104  ;;  %v1253_v0 = vld [vmem:[#allocation2 + $0x40] sm:$0xff]   ;;  %v1257_v4 = vld [vmem:[#allocation2 + $0x48] sm:$0xff]   ;;  %v1386_v22 = vmov 1983009808   ;;  %v50_v24 = vlaneseq }
  0x14   :  { %v1254_v1 = vld [vmem:[#allocation2 + $0xc0] sm:$0xff]   ;;  %1100 = vmatprep.subr.bf16.mxu0 %v1253_v0  ;;  %v1258_v5 = vld [vmem:[#allocation2 + $0xc8] sm:$0xff]   ;;  %v1261_v8 = vld [vmem:[#allocation2 + $0x50] sm:$0xff]   ;;  %v48_v23 = vunpack.c.l.s4 %v1386_v22  ;;  %vm1388_vm0 = vmmov 0   ;;  %s1389_s28 = smov [#allocation5]  }
  0x15   :  { %v1255_v2 = vld [vmem:[#allocation2] sm:$0xff]   ;;  %1122 = vmatprep.subr.bf16.mxu1 %v1254_v1  ;;  %v1259_v6 = vld [vmem:[#allocation2 + $0x8] sm:$0xff]   ;;  %v1262_v9 = vld [vmem:[#allocation2 + $0xd0] sm:$0xff]   ;;  %v51_v30 = vshrl.u32 %v50_v24, 7  ;;  %s1008_s29 = sshll.u32 %s1389_s28, 4  ;;  %s1009_s29 = int_to_ptr.vmem [resolvable:$true] %s1008_s29 }
  0x16   :  { %v1256_v3 = vld [vmem:[#allocation2 + $0x80] sm:$0xff]   ;;  %1101 = vmatpush3.bf16.msra.mxu0 %v1255_v2  ;;  %v1260_v7 = vld [vmem:[#allocation2 + $0x88] sm:$0xff]   ;;  %v1263_v10 = vld [vmem:[#allocation2 + $0x10] sm:$0xff]   ;;  %v49_v29 = vunpack.c.0.s8 %v48_v23  ;;  %p1362_p9 = scmp.lt.s32.totalorder %s1009_s29, %s1009_s29 }
  0x17   :  { %1123 = vmatpush3.bf16.msra.mxu1 %v1256_v3  ;;  %1102 = vmatprep.subr.bf16.mxu0 %v1257_v4  ;;  %v1264_v11 = vld [vmem:[#allocation2 + $0x90] sm:$0xff]   ;;  %v1265_v12 = vld [vmem:[#allocation2 + $0x58] sm:$0xff]   ;;  %v1269_v16 = vld [vmem:[#allocation2 + $0x60] sm:$0xff]  }
  0x18   :  { %1124 = vmatprep.subr.bf16.mxu1 %v1258_v5  ;;  %v1266_v13 = vld [vmem:[#allocation2 + $0xd8] sm:$0xff]   ;;  %v1270_v17 = vld [vmem:[#allocation2 + $0xe0] sm:$0xff]   ;;  %v1273_v20 = vld [vmem:[#allocation2 + $0x68] sm:$0xff]   ;;  %v1442_v35 = vsub.s32 %v49_v29, %v51_v30 }
  0x19   :  { %v1267_v14 = vld [vmem:[#allocation2 + $0x18] sm:$0xff]   ;;  %v1271_v18 = vld [vmem:[#allocation2 + $0x20] sm:$0xff]   ;;  %v1274_v21 = vld [vmem:[#allocation2 + $0xe8] sm:$0xff]  }
  0x1a   :  { %1103 = vmatpush3.bf16.msra.mxu0 %v1259_v6  ;;  %v1268_v15 = vld [vmem:[#allocation2 + $0x98] sm:$0xff]   ;;  %v1272_v19 = vld [vmem:[#allocation2 + $0xa0] sm:$0xff]   ;;  %v1275_v25 = vld [vmem:[#allocation2 + $0x28] sm:$0xff]  }
  0x1b   :  { %1125 = vmatpush3.bf16.msra.mxu1 %v1260_v7  ;;  %1104 = vmatprep.subr.bf16.mxu0 %v1261_v8  ;;  %v1276_v26 = vld [vmem:[#allocation2 + $0xa8] sm:$0xff]   ;;  %v1277_v27 = vld [vmem:[#allocation2 + $0x70] sm:$0xff]   ;;  %v1281_v33 = vld [vmem:[#allocation2 + $0x78] sm:$0xff]  }
  0x1c   :  { %1126 = vmatprep.subr.bf16.mxu1 %v1262_v9  ;;  %v1278_v28 = vld [vmem:[#allocation2 + $0xf0] sm:$0xff]   ;;  %v1282_v34 = vld [vmem:[#allocation2 + $0xf8] sm:$0xff]   ;;  %v42_v38 = vld [vmem:[%s1541_s0] sm:$0xff] }
  0x1d   :  { %v1279_v31 = vld [vmem:[#allocation2 + $0x30] sm:$0xff]   ;;  %v1283_v36 = vld [vmem:[#allocation2 + $0x38] sm:$0xff]   ;;  %v53_v39 = vrot.slane %v42_v38, %v1442_v35  ;;  %v46_v40 = vcombine.high %v42_v38, %v42_v38  ;;  %v1286_v41 = vld [vmem:[#allocation2 + $0x140] sm:$0xff]  }
  0x1e   :  { %1105 = vmatpush3.bf16.msra.mxu0 %v1263_v10  ;;  %v1280_v32 = vld [vmem:[#allocation2 + $0xb0] sm:$0xff]   ;;  %v1284_v37 = vld [vmem:[#allocation2 + $0xb8] sm:$0xff]   ;;  %v1287_v42 = vld [vmem:[#allocation2 + $0x1c0] sm:$0xff]  }
  0x1f   :  { %1127 = vmatpush3.bf16.msra.mxu1 %v1264_v11  ;;  %1106 = vmatprep.subr.bf16.mxu0 %v1265_v12  ;;  %v61_v43 = vcombine.high %v53_v39, %v53_v39  ;;  %v60_v44 = vrot.slane %v46_v40, %v1442_v35  ;;  %v88_v45 = vpack.c.bf16 %v53_v39, %v53_v39  ;;  %v1288_v46 = vld [vmem:[#allocation2 + $0x100] sm:$0xff]   ;;  %v1290_v51 = vld [vmem:[#allocation2 + $0x148] sm:$0xff]   ;;  %v1294_v56 = vld [vmem:[#allocation2 + $0x150] sm:$0xff]  }
  0x20   :  { %1128 = vmatprep.subr.bf16.mxu1 %v1266_v13  ;;  %v1289_v49 = vld [vmem:[#allocation2 + $0x180] sm:$0xff]   ;;  %v1291_v53 = vld [vmem:[#allocation2 + $0x1c8] sm:$0xff]   ;;  %v1295_v57 = vld [vmem:[#allocation2 + $0x1d0] sm:$0xff]  }
  0x21   :  { %v89_v47 = vpack.c.bf16 %v61_v43, %v61_v43  ;;  %v62_v48 = vcombine.high %v60_v44, %v60_v44  ;;  %v90_v50 = vpack.c.bf16 %v60_v44, %v60_v44  ;;  %v1292_v54 = vld [vmem:[#allocation2 + $0x108] sm:$0xff]   ;;  %v1296_v58 = vld [vmem:[#allocation2 + $0x110] sm:$0xff]   ;;  %v1298_v60 = vld [vmem:[#allocation2 + $0x158] sm:$0xff]  }
  0x22   :  { %1107 = vmatpush3.bf16.msra.mxu0 %v1267_v14  ;;  %v1293_v55 = vld [vmem:[#allocation2 + $0x188] sm:$0xff]   ;;  %v1297_v59 = vld [vmem:[#allocation2 + $0x190] sm:$0xff]   ;;  %v1299_v61 = vld [vmem:[#allocation2 + $0x1d8] sm:$0xff]  }
  0x23   :  { %1129 = vmatpush3.bf16.msra.mxu1 %v1268_v15  ;;  %1108 = vmatprep.subr.bf16.mxu0 %v1269_v16  ;;  %v91_v52 = vpack.c.bf16 %v62_v48, %v62_v48  ;;  %v1300_v62 = vld [vmem:[#allocation2 + $0x118] sm:$0xff]   ;;  %v1302_v0 = vld [vmem:[#allocation2 + $0x160] sm:$0xff]   ;;  %v1306_v4 = vld [vmem:[#allocation2 + $0x168] sm:$0xff]  }
  0x24   :  { %1130 = vmatprep.subr.bf16.mxu1 %v1270_v17  ;;  %647 = vmatprep.mubr.bf16.mxu0 %v89_v47  ;;  %v1301_v63 = vld [vmem:[#allocation2 + $0x198] sm:$0xff]   ;;  %v1303_v1 = vld [vmem:[#allocation2 + $0x1e0] sm:$0xff]   ;;  %v1307_v5 = vld [vmem:[#allocation2 + $0x1e8] sm:$0xff]  }
  0x25   :  { %687 = vmatprep.mubr.bf16.mxu1 %v91_v52  ;;  %v1304_v2 = vld [vmem:[#allocation2 + $0x120] sm:$0xff]   ;;  %v1308_v6 = vld [vmem:[#allocation2 + $0x128] sm:$0xff]   ;;  %v1310_v8 = vld [vmem:[#allocation2 + $0x170] sm:$0xff]  }
  0x26   :  { %1109 = vmatpush3.bf16.msra.mxu0 %v1271_v18  ;;  %v1305_v3 = vld [vmem:[#allocation2 + $0x1a0] sm:$0xff]   ;;  %v1309_v7 = vld [vmem:[#allocation2 + $0x1a8] sm:$0xff]   ;;  %v1311_v9 = vld [vmem:[#allocation2 + $0x1f0] sm:$0xff]  }
  0x27   :  { %1131 = vmatpush3.bf16.msra.mxu1 %v1272_v19  ;;  %1110 = vmatprep.subr.bf16.mxu0 %v1273_v20  ;;  %v1312_v10 = vld [vmem:[#allocation2 + $0x130] sm:$0xff]   ;;  %v1314_v12 = vld [vmem:[#allocation2 + $0x178] sm:$0xff]   ;;  %v43_v15 = vld [vmem:[%s1541_s0 + $0x8] sm:$0xff] }
  0x28   :  { %1132 = vmatprep.subr.bf16.mxu1 %v1274_v21  ;;  %v1313_v11 = vld [vmem:[#allocation2 + $0x1b0] sm:$0xff]   ;;  %v1315_v13 = vld [vmem:[#allocation2 + $0x1f8] sm:$0xff]   ;;  %v70_v17 = vrot.slane %v43_v15, %v1442_v35  ;;  %v63_v18 = vcombine.high %v43_v15, %v43_v15  ;;  %v1331_v39 = vld [vmem:[%s1546_s5 + $0x20] sm:$0xff]  }
  0x29   :  { %v1316_v14 = vld [vmem:[#allocation2 + $0x138] sm:$0xff]   ;;  %v1321_v29 = vld [vmem:[%s1544_s3 + $0x10] sm:$0xff]   ;;  %v1332_v40 = vld [vmem:[%s1546_s5 + $0x28] sm:$0xff]  }
  0x2a   :  { %1111 = vmatpush3.bf16.msra.mxu0 %v1275_v25  ;;  %v1317_v16 = vld [vmem:[#allocation2 + $0x1b8] sm:$0xff]   ;;  %v78_v19 = vcombine.high %v70_v17, %v70_v17  ;;  %v77_v20 = vrot.slane %v63_v18, %v1442_v35  ;;  %v92_v21 = vpack.c.bf16 %v70_v17, %v70_v17  ;;  %v1327_v35 = vld [vmem:[%s1546_s5] sm:$0xff]  }
  0x2b   :  { %1133 = vmatpush3.bf16.msra.mxu1 %v1276_v26  ;;  %1112 = vmatprep.subr.bf16.mxu0 %v1277_v27  ;;  %v1319_v26 = vld [vmem:[%s1544_s3] sm:$0xff]   ;;  %v1387_v27 = vmov 0.0   ;;  %v1322_v30 = vld [vmem:[%s1544_s3 + $0x18] sm:$0xff]  }
  0x2c   :  { %1134 = vmatprep.subr.bf16.mxu1 %v1278_v28  ;;  %v93_v22 = vpack.c.bf16 %v78_v19, %v78_v19  ;;  %v79_v23 = vcombine.high %v77_v20, %v77_v20  ;;  %v94_v24 = vpack.c.bf16 %v77_v20, %v77_v20  ;;  %v1320_v28 = vld [vmem:[%s1544_s3 + $0x8] sm:$0xff]   ;;  %v1330_v38 = vld [vmem:[%s1546_s5 + $0x18] sm:$0xff]  }
  0x2e   :  { %1113 = vmatpush3.bf16.msra.mxu0 %v1279_v31  ;;  %v95_v25 = vpack.c.bf16 %v79_v23, %v79_v23  ;;  %v1323_v31 = vld [vmem:[%s1544_s3 + $0x20] sm:$0xff]  }
  0x2f   :  { %1135 = vmatpush3.bf16.msra.mxu1 %v1280_v32  ;;  %1114 = vmatprep.subr.bf16.mxu0 %v1281_v33  ;;  %v1324_v32 = vld [vmem:[%s1544_s3 + $0x28] sm:$0xff]   ;;  %v1325_v33 = vld [vmem:[%s1544_s3 + $0x30] sm:$0xff]  }
  0x30   :  { %1136 = vmatprep.subr.bf16.mxu1 %v1282_v34  ;;  %v1326_v34 = vld [vmem:[%s1544_s3 + $0x38] sm:$0xff]  }
  0x32   :  { %1115 = vmatpush3.bf16.msra.mxu0 %v1283_v36  ;;  %v1328_v36 = vld [vmem:[%s1546_s5 + $0x8] sm:$0xff]  }
  0x33   :  { %1137 = vmatpush3.bf16.msra.mxu1 %v1284_v37  ;;  %1144 = vmatprep.subr.bf16.mxu0 %v1286_v41  ;;  %v1329_v37 = vld [vmem:[%s1546_s5 + $0x10] sm:$0xff]  }
  0x34   :  { %1166 = vmatprep.subr.bf16.mxu1 %v1287_v42  ;;  %v1017_v42 = vld [vmem:[%s1543_s2] ss:$0 sm:$0xff] }
  0x35   :  { %648 = vmatmul.mubr.bf16.vlgmr.msra.gmra.mrb[0].mxu0 %v88_v45 }
  0x36   :  { %1145 = vmatpush3.bf16.msra.mxu0 %v1288_v46  ;;  %688 = vmatmul.mubr.bf16.vlgmr.msra.gmra.mrb[0].mxu1 %v90_v50 }
  0x37   :  { %1146 = vmatprep.subr.bf16.mxu0 %v1290_v51  ;;  %1167 = vmatpush3.bf16.msra.mxu1 %v1289_v49 }
  0x38   :  { %1168 = vmatprep.subr.bf16.mxu1 %v1291_v53  ;;  %727 = vmatprep.mubr.bf16.mxu0 %v93_v22 }
  0x39   :  { %767 = vmatprep.mubr.bf16.mxu1 %v95_v25 }
  0x3a   :  { %1147 = vmatpush3.bf16.msra.mxu0 %v1292_v54 }
  0x3b   :  { %1148 = vmatprep.subr.bf16.mxu0 %v1294_v56  ;;  %1169 = vmatpush3.bf16.msra.mxu1 %v1293_v55 }
  0x3c   :  { %1170 = vmatprep.subr.bf16.mxu1 %v1295_v57 }
  0x3e   :  { %1149 = vmatpush3.bf16.msra.mxu0 %v1296_v58 }
  0x3f   :  { %1150 = vmatprep.subr.bf16.mxu0 %v1298_v60  ;;  %1171 = vmatpush3.bf16.msra.mxu1 %v1297_v59 }
  0x40   :  { %1172 = vmatprep.subr.bf16.mxu1 %v1299_v61 }
  0x42   :  { %1151 = vmatpush3.bf16.msra.mxu0 %v1300_v62 }
  0x43   :  { %1152 = vmatprep.subr.bf16.mxu0 %v1302_v0  ;;  %1173 = vmatpush3.bf16.msra.mxu1 %v1301_v63 }
  0x44   :  { %1174 = vmatprep.subr.bf16.mxu1 %v1303_v1 }
  0x46   :  { %1153 = vmatpush3.bf16.msra.mxu0 %v1304_v2 }
  0x47   :  { %1154 = vmatprep.subr.bf16.mxu0 %v1306_v4  ;;  %1175 = vmatpush3.bf16.msra.mxu1 %v1305_v3  ;;  %v1333_v4 = vld [vmem:[%s1546_s5 + $0x30] sm:$0xff]  }
  0x48   :  { %1176 = vmatprep.subr.bf16.mxu1 %v1307_v5  ;;  %v1334_v5 = vld [vmem:[%s1546_s5 + $0x38] sm:$0xff]  }
  0x4a   :  { %1155 = vmatpush3.bf16.msra.mxu0 %v1308_v6  ;;  %v1082_v6 = vld [vmem:[%s1545_s4] ss:$0 sm:$0xff]  ;;  %s1357_s4 = scalar_lea.vmem %s1009_s29, 32 }
  0x4b   :  { %1156 = vmatprep.subr.bf16.mxu0 %v1310_v8  ;;  %1177 = vmatpush3.bf16.msra.mxu1 %v1309_v7  ;;  %p1358_p8 = scmp.ne.s32.totalorder %s1009_s29, %s1357_s4  ;;  %p1363_p10 = scmp.lt.s32.totalorder %s1357_s4, %s1357_s4 }
  0x4c   :  { %1178 = vmatprep.subr.bf16.mxu1 %v1311_v9 }
  0x4d   :  { %p1364_p11 = por %p1363_p10, %p1362_p9 }
  0x4e   :  { %1157 = vmatpush3.bf16.msra.mxu0 %v1312_v10 }
  0x4f   :  { %1158 = vmatprep.subr.bf16.mxu0 %v1314_v12  ;;  %1179 = vmatpush3.bf16.msra.mxu1 %v1313_v11  ;;  %p1365_p12 = pnand %p1364_p11, %p1358_p8 }
  0x50   :  { %1180 = vmatprep.subr.bf16.mxu1 %v1315_v13 }
  0x52   :  { %1159 = vmatpush3.bf16.msra.mxu0 %v1316_v14  ;;  %v1091_v14 = vld [vmem:[%s1547_s6] ss:$0 sm:$0xff] }
  0x53   :  { %1181 = vmatpush3.bf16.msra.mxu1 %v1317_v16  ;;  %1206 = vmatprep.subr.bf16.mxu0 %v1387_v27 }
  0x54   :  { %1226 = vmatprep.subr.bf16.mxu1 %v1387_v27 }
  0x55   :  { %728 = vmatmul.mubr.bf16.vlgmr.msra.gmra.mrb[4].mxu0 %v92_v21 }
  0x56   :  { %768 = vmatmul.mubr.bf16.vlgmr.msra.gmra.mrb[4].mxu1 %v94_v24  ;;  %1207 = vmatpush3.bf16.msra.mxu0 %v1319_v26 }
  0x57   :  { %1208 = vmatprep.subr.bf16.mxu0 %v1387_v27  ;;  %1222 = vmatprep.mubr.msk.bf16.mxu0 %vm1388_vm0, %v1387_v27 }
  0x58   :  { %1242 = vmatprep.mubr.msk.bf16.mxu1 %vm1388_vm0, %v1387_v27  ;;  %1227 = vmatpush3.bf16.msra.mxu1 %v1327_v35 }
  0x59   :  { %1228 = vmatprep.subr.bf16.mxu1 %v1387_v27 }
  0x5a   :  { %1209 = vmatpush3.bf16.msra.mxu0 %v1320_v28 }
  0x5b   :  { %1210 = vmatprep.subr.bf16.mxu0 %v1387_v27 }
  0x5c   :  { %1229 = vmatpush3.bf16.msra.mxu1 %v1328_v36 }
  0x5d   :  { %1230 = vmatprep.subr.bf16.mxu1 %v1387_v27 }
  0x5e   :  { %1211 = vmatpush3.bf16.msra.mxu0 %v1321_v29 }
  0x5f   :  { %1212 = vmatprep.subr.bf16.mxu0 %v1387_v27 }
  0x60   :  { %1231 = vmatpush3.bf16.msra.mxu1 %v1329_v37 }
  0x61   :  { %1232 = vmatprep.subr.bf16.mxu1 %v1387_v27 }
  0x62   :  { %1213 = vmatpush3.bf16.msra.mxu0 %v1322_v30 }
  0x63   :  { %1214 = vmatprep.subr.bf16.mxu0 %v1387_v27 }
  0x64   :  { %1233 = vmatpush3.bf16.msra.mxu1 %v1330_v38 }
  0x65   :  { %1234 = vmatprep.subr.bf16.mxu1 %v1387_v27 }
  0x66   :  { %1215 = vmatpush3.bf16.msra.mxu0 %v1323_v31 }
  0x67   :  { %1216 = vmatprep.subr.bf16.mxu0 %v1387_v27 }
  0x68   :  { %1235 = vmatpush3.bf16.msra.mxu1 %v1331_v39 }
  0x69   :  { %1236 = vmatprep.subr.bf16.mxu1 %v1387_v27 }
  0x6a   :  { %1217 = vmatpush3.bf16.msra.mxu0 %v1324_v32 }
  0x6b   :  { %1218 = vmatprep.subr.bf16.mxu0 %v1387_v27 }
  0x6c   :  { %1237 = vmatpush3.bf16.msra.mxu1 %v1332_v40 }
  0x6d   :  { %1238 = vmatprep.subr.bf16.mxu1 %v1387_v27 }
  0x6e   :  { %1219 = vmatpush3.bf16.msra.mxu0 %v1325_v33 }
  0x6f   :  { %1220 = vmatprep.subr.bf16.mxu0 %v1387_v27 }
  0x70   :  { %1239 = vmatpush3.bf16.msra.mxu1 %v1333_v4 }
  0x71   :  { %1240 = vmatprep.subr.bf16.mxu1 %v1387_v27 }
  0x72   :  { %1221 = vmatpush3.bf16.msra.mxu0 %v1326_v34 }
  0x74   :  { %1241 = vmatpush3.bf16.msra.mxu1 %v1334_v5 }
 0x108   :  { %v1116_v41 = vpop.f32.mrb[0].mxu0 }
 0x109   :  { %v1117_v43 = vpop.f32.mrb[1].mxu0  ;;  %v1138_v44 = vpop.f32.mrb[0].mxu1 }
 0x10a   :  { %v1118_v45 = vadd.f32 %v1117_v43, %v1116_v41  ;;  %v1119_v46 = vpop.f32.mrb[2].mxu0  ;;  %v1139_v47 = vpop.f32.mrb[1].mxu1 }
 0x10b   :  { %v1120_v48 = vpop.f32.mrb[3].mxu0  ;;  %v1140_v50 = vadd.f32 %v1139_v47, %v1138_v44  ;;  %v1141_v51 = vpop.f32.mrb[2].mxu1 }
 0x10c   :  { %v650_v49 = vadd.f32 %v1118_v45, %v1017_v42  ;;  %v1142_v52 = vpop.f32.mrb[3].mxu1 }
 0x10e   :  { %v690_v53 = vadd.f32 %v1140_v50, %v650_v49 }
 0x128   :  { %v1160_v54 = vpop.f32.mrb[4].mxu0 }
 0x129   :  { %v1161_v55 = vpop.f32.mrb[5].mxu0  ;;  %v1182_v56 = vpop.f32.mrb[4].mxu1 }
 0x12a   :  { %v1162_v57 = vadd.f32 %v1161_v55, %v1160_v54  ;;  %v1163_v58 = vpop.f32.mrb[6].mxu0  ;;  %v1183_v59 = vpop.f32.mrb[5].mxu1 }
 0x12b   :  { %v1164_v60 = vpop.f32.mrb[7].mxu0  ;;  %v1184_v62 = vadd.f32 %v1183_v59, %v1182_v56  ;;  %v1185_v63 = vpop.f32.mrb[6].mxu1 }
 0x12c   :  { %v730_v61 = vadd.f32 %v1162_v57, %v690_v53  ;;  %v1186_v0 = vpop.f32.mrb[7].mxu1 }
 0x12e   :  { %v770_v1 = vadd.f32 %v1184_v62, %v730_v61 }
 0x130   :  { %v775_v2 = vmax.f32 %v770_v1, 0.0 }
 0x132   :  { %v776_v3 = vpack.c.bf16 %v775_v2, %v775_v2 }
 0x134   :  { %1223 = vmatmul.mubr.bf16.vlgmr.msra.gmra.mrb[8].mxu0 %v776_v3 }
 0x207   :  { %v882_v7 = vpop.f32.mrb[8].mxu0 }
 0x208   :  { %v883_v8 = vadd.f32 %v1082_v6, %v882_v7  ;;  %v1224_v9 = vpop.f32.mrb[9].mxu0 }
 0x209   :  { %v885_v10 = vpop.f32.mrb[10].mxu0 }
 0x20a   :  { %v888_v11 = vmax.f32 %v883_v8, 0.0  ;;  %v1225_v12 = vpop.f32.mrb[11].mxu0 }
 0x20c   :  { %v889_v13 = vpack.c.bf16 %v888_v11, %v888_v11 }
 0x20e   :  { %1243 = vmatmul.mubr.bf16.vlgmr.msra.gmra.mrb[8].mxu1 %v889_v13 }
 0x2e1   :  { %v995_v15 = vpop.f32.mrb[8].mxu1 }
 0x2e2   :  { %v996_v16 = vadd.f32 %v1091_v14, %v995_v15  ;;  %v1244_v17 = vpop.f32.mrb[9].mxu1 }
 0x2e3   :  { %v998_v18 = vpop.f32.mrb[10].mxu1 }
 0x2e4   :  { %1001 = vst [vmem:[#allocation5] sm:$0x3] %v996_v16  ;;  %v1245_v19 = vpop.f32.mrb[11].mxu1 }
 0x2e5   :  { %1368 = shalt.err (!%p1365_p12)
}
 0x2e6   :  { %s1369_s6 = scalar_lea.hbm %s1548_s7, 32 }
 0x2e7   :  { %p1370_p13 = scmp.ne.s32.totalorder %s1548_s7, %s1369_s6  ;;  %p1373_p0 = scmp.lt.u32.totalorder %s1369_s6, %s1548_s7 }
 0x2e9   :  { %p1375_p1 = pnand %p1373_p0, %p1370_p13 }
 0x2eb   :  { %1378 = shalt.err (!%p1375_p1)
}
 0x2ec   :  { %1011 = dma.vmem_to_hbm [thread:$0]  %s1009_s29, 32, %s1548_s7, [#allocation4]  }
 0x2ed   :  { %1381 = dma.done.wait [#allocation4], 32  }
 0x2ee   :  { %1382 = vsyncadd [#allocation4], 4294967264 }
 0x2ef   :  { %1015 = vsyncpa [#allocation3], 1 }
 0x2f0   :  { %1016 = vsyncpa [#allocation4], 1 }

</bundles_post_ra>
